<compile_context>
chip_gen: v6e
topology: v6e:2x2x1
jax: 0.10.0
libtpu: 0.0.40
codegen_flags: <defaults>
</compile_context>

<pallas_src>
import jax
import jax.numpy as jnp
from jax.experimental import pallas as pl
from jax.experimental.pallas import tpu as pltpu

_LANE = 128
_MAX_TILE_BYTES = 8 << 20          # 8 MiB per block buffer
_PAD_SLAB_WIDTH = 512              # lane-dense width for re-slabbed inputs
_SPLIT_THRESHOLD_BYTES = 2 << 20   # above this, force >= 2 row blocks (v7x: 2 TCs)


def add_module_kernel(x_ref, o_ref):
    # y = x + x ; z = y + x  ==  3 * x  (identical result, one VALU op per vreg)
    o_ref[...] = x_ref[...] * 3


def _sublane_multiple(dtype):
    itemsize = jnp.dtype(dtype).itemsize
    if itemsize >= 4:
        return 8
    if itemsize == 2:
        return 16
    return 32


def _pick_tiles(R, C, dtype):
    """Choose (tile_rows, tile_cols) for a lane-dense (R, C) slab.

    Prefers full-width blocks (fully contiguous HBM DMA segments), tiling only
    over rows; splits the lane dim only when a minimal full-width row slice
    would exceed the per-block VMEM budget.
    """
    itemsize = jnp.dtype(dtype).itemsize
    sub = _sublane_multiple(dtype)
    row_bytes = C * itemsize
    rows_fit = _MAX_TILE_BYTES // row_bytes if row_bytes > 0 else R

    if rows_fit >= sub or rows_fit >= R:
        tile_cols = C                          # full width: contiguous DMA
        if R <= rows_fit:
            tile_rows = R                      # single row-block (full dim, legal)
        else:
            tile_rows = max(sub, (rows_fit // sub) * sub)
        # Mem-bound streaming op: give v7x's 2 TensorCores at least 2 row blocks.
        if tile_rows >= R and R * row_bytes > _SPLIT_THRESHOLD_BYTES and R >= 2 * sub:
            half = (R + 1) // 2
            tile_rows = ((half + sub - 1) // sub) * sub
    else:
        # Even `sub` full-width rows blow the budget: split the lane dim too.
        tile_rows = R if R < sub else sub
        cols_fit = _MAX_TILE_BYTES // (max(tile_rows, 1) * itemsize)
        tile_cols = max(_LANE, (cols_fit // _LANE) * _LANE)

    return tile_rows, tile_cols


def _run_slab(x2):
    R, C = x2.shape
    itemsize = jnp.dtype(x2.dtype).itemsize
    tile_rows, tile_cols = _pick_tiles(R, C, x2.dtype)
    grid = (pl.cdiv(R, tile_rows), pl.cdiv(C, tile_cols))

    # (in + out) x double-buffer residency plus headroom; stays under the
    # smallest physical VMEM (v7x: 64 MiB per TC) and lifts v5e's 16 MiB default.
    tile_bytes = tile_rows * tile_cols * itemsize
    resident = 2 * 2 * tile_bytes
    vmem_limit = int(min(max(resident + (8 << 20), 32 << 20), 56 << 20))

    return pl.pallas_call(
        add_module_kernel,
        out_shape=jax.ShapeDtypeStruct((R, C), x2.dtype),
        grid=grid,
        in_specs=[pl.BlockSpec((tile_rows, tile_cols), lambda i, j: (i, j))],
        out_specs=pl.BlockSpec((tile_rows, tile_cols), lambda i, j: (i, j)),
        compiler_params=pltpu.CompilerParams(
            # TODO(synk): on v7x, verify both TensorCores stream; if not, switch
            # the leading axis to pltpu.CORE_PARALLEL.
            dimension_semantics=("parallel", "parallel"),
            vmem_limit_bytes=vmem_limit,
        ),
    )(x2)


def add_module_forward(x):
    """AddModule.forward: z = (x + x) + x  ==  3 * x, via a Pallas TPU kernel."""
    orig_shape = x.shape
    n = x.size
    if n == 0:
        return x  # empty array: nothing to compute

    if x.ndim >= 2 and x.shape[-1] % _LANE == 0:
        # Natural, copy-free lane-dense slab: last dim stays on lanes.
        out2 = _run_slab(x.reshape(-1, x.shape[-1]))
        return out2.reshape(orig_shape)

    # Narrow / misaligned last dim (or ndim < 2): re-slab the flat array into a
    # padded (rows, 512) lane-dense slab so every store is an unmasked full-lane
    # vst, then strip the tail.
    flat = x.reshape(-1)
    pad = (-n) % _PAD_SLAB_WIDTH
    if pad:
        flat = jnp.pad(flat, (0, pad))
    out2 = _run_slab(flat.reshape(-1, _PAD_SLAB_WIDTH))
    return out2.reshape(-1)[:n].reshape(orig_shape)


if __name__ == "__main__":
    key = jax.random.PRNGKey(0)
    # Small lane-dense demo shape (rows multiple of 8, cols multiple of 128):
    # takes the copy-free full-width path, grid (1, 1).
    x = jax.random.normal(key, (256, 512), dtype=jnp.float32)

    z = add_module_forward(x)
    jax.block_until_ready(z)

    expected = (x + x) + x
    assert z.shape == x.shape and z.dtype == x.dtype
    assert jnp.allclose(z, expected, atol=1e-6, rtol=1e-6)

    print("KERNEL_OK")
</pallas_src>

<mosaic_0001>
module attributes {stable_mosaic.version = 11 : i64} {
  func.func @add_module_kernel(%arg0: i32, %arg1: i32, %arg2: memref<256x512xf32, #tpu.memory_space<vmem>>, %arg3: memref<256x512xf32, #tpu.memory_space<vmem>>) attributes {dimension_semantics = [#tpu.dimension_semantics<parallel>, #tpu.dimension_semantics<parallel>], iteration_bounds = array<i64: 1, 1>, scalar_prefetch = 0 : i64, scratch_operands = 0 : i64, tpu.core_type = #tpu.core_type<tc>, window_params = [{transform_indices = @transform_0, window_bounds = array<i64: 256, 512>}, {transform_indices = @transform_1, window_bounds = array<i64: 256, 512>}]} {
    %c0 = arith.constant 0 : index
    %c0_0 = arith.constant 0 : index
    %0 = vector.load %arg2[%c0, %c0_0] : memref<256x512xf32, #tpu.memory_space<vmem>>, vector<256x512xf32>
    %cst = arith.constant 3.000000e+00 : f32
    %1 = vector.broadcast %cst : f32 to vector<256x512xf32>
    %2 = arith.mulf %0, %1 : vector<256x512xf32>
    %c0_1 = arith.constant 0 : index
    %c0_2 = arith.constant 0 : index
    %3 = vector.load %arg3[%c0_1, %c0_2] : memref<256x512xf32, #tpu.memory_space<vmem>>, vector<256x512xf32>
    tpu.vector_store %arg3[%c0_1, %c0_2], %2 {strides = array<i32>} : memref<256x512xf32, #tpu.memory_space<vmem>>, vector<256x512xf32>,
    return
  }
  func.func @transform_0(%arg0: i32, %arg1: i32) -> (i32, i32) {
    %c0_i32 = arith.constant 0 : i32
    return %arg0, %arg1 : i32, i32
  }
  func.func @transform_1(%arg0: i32, %arg1: i32) -> (i32, i32) {
    %c0_i32 = arith.constant 0 : i32
    return %arg0, %arg1 : i32, i32
  }
}

</mosaic_0001>

<bundles_post_ra>
// kernel: tpu_custom_call.1
= control target key start
LH: loop header
LB: loop body
LE: loop exit
PB: predicated region body
PF: predicated region fallthrough
CT: control target
= control target key end

     0   :  { %6 = vsyncpa [#allocation3], 0  ;;  %s501_s0 = inlined_call_operand.hbm [shape: f32[256,512], index: 0, kind: input, shape index: {}]   ;;  %s502_s1 = inlined_call_operand.hbm [shape: f32[256,512], index: 1, kind: output, shape index: {}]  }
   0x1   :  { %7 = vsyncpa [#allocation4], 0  ;;  %s472_s6 = smov [#allocation2]  }
   0x2   :  { %s13_s7 = sshll.u32 %s472_s6, 4  ;;  %s14_s7 = int_to_ptr.vmem [resolvable:$true] %s13_s7 }
   0x3   :  { %s436_s8 = scalar_lea.vmem %s14_s7, 16384  ;;  %p441_p1 = scmp.lt.s32.totalorder %s14_s7, %s14_s7 }
   0x4   :  { %p437_p0 = scmp.ne.s32.totalorder %s14_s7, %s436_s8  ;;  %p442_p2 = scmp.lt.s32.totalorder %s436_s8, %s436_s8 }
   0x6   :  { %p443_p3 = por %p442_p2, %p441_p1 }
   0x8   :  { %p444_p4 = pnand %p443_p3, %p437_p0 }
   0xa   :  { %447 = shalt.err (!%p444_p4)
}
   0xb   :  { %s473_s9 = smov 512   ;;  %s474_s10 = smov 32  }
   0xc   :  { %19 = dma.hbm_to_vmem [thread:$0]  %s501_s0, 16384, %s14_s7, [#allocation3], %s473_s9, %s473_s9, %s474_s10  }
   0xd   :  { %468 = dma.done.wait [#allocation3], 16384  }
   0xe   :  { %469 = vsyncadd [#allocation3], 4294950912  ;;  %v23_v0 = vld [vmem:[#allocation2] sm:$0xff]  ;;  %v24_v1 = vld [vmem:[#allocation2 + $0x8] sm:$0xff]  ;;  %s475_s13 = smov [#allocation5]  }
   0xf   :  { %v25_v2 = vld [vmem:[#allocation2 + $0x10] sm:$0xff]  ;;  %s492_s14 = sshll.u32 %s475_s13, 4  ;;  %v151_v3 = vmul.f32 3.0, %v23_v0  ;;  %v152_v4 = vmul.f32 3.0, %v24_v1  ;;  %v26_v6 = vld [vmem:[#allocation2 + $0x18] sm:$0xff]  ;;  %v27_v7 = vld [vmem:[#allocation2 + $0x20] sm:$0xff]  ;;  %s413_s14 = int_to_ptr.vmem [resolvable:$true] %s492_s14 }
  0x10   :  { %v153_v5 = vmul.f32 3.0, %v25_v2  ;;  %v28_v8 = vld [vmem:[#allocation2 + $0x28] sm:$0xff]  ;;  %v154_v9 = vmul.f32 3.0, %v26_v6  ;;  %v155_v10 = vmul.f32 3.0, %v27_v7  ;;  %v29_v12 = vld [vmem:[#allocation2 + $0x30] sm:$0xff]  ;;  %v30_v13 = vld [vmem:[#allocation2 + $0x38] sm:$0xff]  ;;  %p453_p6 = scmp.lt.s32.totalorder %s413_s14, %s413_s14 }
  0x11   :  { %v156_v11 = vmul.f32 3.0, %v28_v8  ;;  %v31_v14 = vld [vmem:[#allocation2 + $0x40] sm:$0xff]  ;;  %279 = vst [vmem:[#allocation5] sm:$0xff] %v151_v3  ;;  %280 = vst [vmem:[#allocation5 + $0x8] sm:$0xff] %v152_v4  ;;  %v157_v15 = vmul.f32 3.0, %v29_v12  ;;  %v158_v16 = vmul.f32 3.0, %v30_v13 }
  0x12   :  { %281 = vst [vmem:[#allocation5 + $0x10] sm:$0xff] %v153_v5  ;;  %v159_v17 = vmul.f32 3.0, %v31_v14  ;;  %v32_v18 = vld [vmem:[#allocation2 + $0x48] sm:$0xff]  ;;  %v33_v19 = vld [vmem:[#allocation2 + $0x50] sm:$0xff]  ;;  %v34_v20 = vld [vmem:[#allocation2 + $0x58] sm:$0xff]  ;;  %s448_s0 = scalar_lea.vmem %s413_s14, 16384 }
  0x13   :  { %282 = vst [vmem:[#allocation5 + $0x18] sm:$0xff] %v154_v9  ;;  %283 = vst [vmem:[#allocation5 + $0x20] sm:$0xff] %v155_v10  ;;  %v160_v21 = vmul.f32 3.0, %v32_v18  ;;  %v161_v22 = vmul.f32 3.0, %v33_v19  ;;  %v162_v23 = vmul.f32 3.0, %v34_v20  ;;  %v35_v24 = vld [vmem:[#allocation2 + $0x60] sm:$0xff]  ;;  %p449_p5 = scmp.ne.s32.totalorder %s413_s14, %s448_s0  ;;  %p454_p7 = scmp.lt.s32.totalorder %s448_s0, %s448_s0 }
  0x14   :  { %284 = vst [vmem:[#allocation5 + $0x28] sm:$0xff] %v156_v11  ;;  %v36_v25 = vld [vmem:[#allocation2 + $0x68] sm:$0xff]  ;;  %v37_v26 = vld [vmem:[#allocation2 + $0x70] sm:$0xff]  ;;  %285 = vst [vmem:[#allocation5 + $0x30] sm:$0xff] %v157_v15  ;;  %v163_v27 = vmul.f32 3.0, %v35_v24 }
  0x15   :  { %286 = vst [vmem:[#allocation5 + $0x38] sm:$0xff] %v158_v16  ;;  %287 = vst [vmem:[#allocation5 + $0x40] sm:$0xff] %v159_v17  ;;  %v164_v28 = vmul.f32 3.0, %v36_v25  ;;  %v165_v29 = vmul.f32 3.0, %v37_v26  ;;  %v38_v30 = vld [vmem:[#allocation2 + $0x78] sm:$0xff]  ;;  %v39_v31 = vld [vmem:[#allocation2 + $0x80] sm:$0xff]  ;;  %p455_p8 = por %p454_p7, %p453_p6 }
  0x16   :  { %v40_v32 = vld [vmem:[#allocation2 + $0x88] sm:$0xff]  ;;  %288 = vst [vmem:[#allocation5 + $0x48] sm:$0xff] %v160_v21  ;;  %289 = vst [vmem:[#allocation5 + $0x50] sm:$0xff] %v161_v22  ;;  %v166_v33 = vmul.f32 3.0, %v38_v30  ;;  %v167_v34 = vmul.f32 3.0, %v39_v31  ;;  %v41_v36 = vld [vmem:[#allocation2 + $0x90] sm:$0xff] }
  0x17   :  { %290 = vst [vmem:[#allocation5 + $0x58] sm:$0xff] %v162_v23  ;;  %v168_v35 = vmul.f32 3.0, %v40_v32  ;;  %v42_v37 = vld [vmem:[#allocation2 + $0x98] sm:$0xff]  ;;  %v43_v38 = vld [vmem:[#allocation2 + $0xa0] sm:$0xff]  ;;  %291 = vst [vmem:[#allocation5 + $0x60] sm:$0xff] %v163_v27  ;;  %v169_v39 = vmul.f32 3.0, %v41_v36  ;;  %p456_p9 = pnand %p455_p8, %p449_p5 }
  0x18   :  { %292 = vst [vmem:[#allocation5 + $0x68] sm:$0xff] %v164_v28  ;;  %293 = vst [vmem:[#allocation5 + $0x70] sm:$0xff] %v165_v29  ;;  %v170_v40 = vmul.f32 3.0, %v42_v37  ;;  %v171_v41 = vmul.f32 3.0, %v43_v38  ;;  %v44_v42 = vld [vmem:[#allocation2 + $0xa8] sm:$0xff]  ;;  %v45_v43 = vld [vmem:[#allocation2 + $0xb0] sm:$0xff] }
  0x19   :  { %v46_v44 = vld [vmem:[#allocation2 + $0xb8] sm:$0xff]  ;;  %294 = vst [vmem:[#allocation5 + $0x78] sm:$0xff] %v166_v33  ;;  %295 = vst [vmem:[#allocation5 + $0x80] sm:$0xff] %v167_v34  ;;  %v172_v45 = vmul.f32 3.0, %v44_v42  ;;  %v173_v46 = vmul.f32 3.0, %v45_v43  ;;  %v47_v48 = vld [vmem:[#allocation2 + $0xc0] sm:$0xff] }
  0x1a   :  { %296 = vst [vmem:[#allocation5 + $0x88] sm:$0xff] %v168_v35  ;;  %v174_v47 = vmul.f32 3.0, %v46_v44  ;;  %v48_v49 = vld [vmem:[#allocation2 + $0xc8] sm:$0xff]  ;;  %v49_v50 = vld [vmem:[#allocation2 + $0xd0] sm:$0xff]  ;;  %297 = vst [vmem:[#allocation5 + $0x90] sm:$0xff] %v169_v39  ;;  %v175_v51 = vmul.f32 3.0, %v47_v48 }
  0x1b   :  { %298 = vst [vmem:[#allocation5 + $0x98] sm:$0xff] %v170_v40  ;;  %299 = vst [vmem:[#allocation5 + $0xa0] sm:$0xff] %v171_v41  ;;  %v176_v52 = vmul.f32 3.0, %v48_v49  ;;  %v177_v53 = vmul.f32 3.0, %v49_v50  ;;  %v50_v54 = vld [vmem:[#allocation2 + $0xd8] sm:$0xff]  ;;  %v51_v55 = vld [vmem:[#allocation2 + $0xe0] sm:$0xff] }
  0x1c   :  { %v52_v56 = vld [vmem:[#allocation2 + $0xe8] sm:$0xff]  ;;  %300 = vst [vmem:[#allocation5 + $0xa8] sm:$0xff] %v172_v45  ;;  %301 = vst [vmem:[#allocation5 + $0xb0] sm:$0xff] %v173_v46  ;;  %v178_v57 = vmul.f32 3.0, %v50_v54  ;;  %v179_v58 = vmul.f32 3.0, %v51_v55  ;;  %v53_v60 = vld [vmem:[#allocation2 + $0xf0] sm:$0xff] }
  0x1d   :  { %302 = vst [vmem:[#allocation5 + $0xb8] sm:$0xff] %v174_v47  ;;  %v180_v59 = vmul.f32 3.0, %v52_v56  ;;  %v54_v61 = vld [vmem:[#allocation2 + $0xf8] sm:$0xff]  ;;  %v55_v62 = vld [vmem:[#allocation2 + $0x100] sm:$0xff]  ;;  %303 = vst [vmem:[#allocation5 + $0xc0] sm:$0xff] %v175_v51  ;;  %v181_v63 = vmul.f32 3.0, %v53_v60 }
  0x1e   :  { %304 = vst [vmem:[#allocation5 + $0xc8] sm:$0xff] %v176_v52  ;;  %305 = vst [vmem:[#allocation5 + $0xd0] sm:$0xff] %v177_v53  ;;  %v182_v0 = vmul.f32 3.0, %v54_v61  ;;  %v183_v1 = vmul.f32 3.0, %v55_v62  ;;  %v56_v2 = vld [vmem:[#allocation2 + $0x108] sm:$0xff]  ;;  %v57_v3 = vld [vmem:[#allocation2 + $0x110] sm:$0xff] }
  0x1f   :  { %v58_v4 = vld [vmem:[#allocation2 + $0x118] sm:$0xff]  ;;  %306 = vst [vmem:[#allocation5 + $0xd8] sm:$0xff] %v178_v57  ;;  %307 = vst [vmem:[#allocation5 + $0xe0] sm:$0xff] %v179_v58  ;;  %v184_v5 = vmul.f32 3.0, %v56_v2  ;;  %v185_v6 = vmul.f32 3.0, %v57_v3  ;;  %v59_v8 = vld [vmem:[#allocation2 + $0x120] sm:$0xff] }
  0x20   :  { %308 = vst [vmem:[#allocation5 + $0xe8] sm:$0xff] %v180_v59  ;;  %v186_v7 = vmul.f32 3.0, %v58_v4  ;;  %v60_v9 = vld [vmem:[#allocation2 + $0x128] sm:$0xff]  ;;  %v61_v10 = vld [vmem:[#allocation2 + $0x130] sm:$0xff]  ;;  %309 = vst [vmem:[#allocation5 + $0xf0] sm:$0xff] %v181_v63  ;;  %v187_v11 = vmul.f32 3.0, %v59_v8 }
  0x21   :  { %310 = vst [vmem:[#allocation5 + $0xf8] sm:$0xff] %v182_v0  ;;  %311 = vst [vmem:[#allocation5 + $0x100] sm:$0xff] %v183_v1  ;;  %v188_v12 = vmul.f32 3.0, %v60_v9  ;;  %v189_v13 = vmul.f32 3.0, %v61_v10  ;;  %v62_v14 = vld [vmem:[#allocation2 + $0x138] sm:$0xff]  ;;  %v63_v15 = vld [vmem:[#allocation2 + $0x140] sm:$0xff] }
  0x22   :  { %v64_v16 = vld [vmem:[#allocation2 + $0x148] sm:$0xff]  ;;  %312 = vst [vmem:[#allocation5 + $0x108] sm:$0xff] %v184_v5  ;;  %313 = vst [vmem:[#allocation5 + $0x110] sm:$0xff] %v185_v6  ;;  %v190_v17 = vmul.f32 3.0, %v62_v14  ;;  %v191_v18 = vmul.f32 3.0, %v63_v15  ;;  %v65_v20 = vld [vmem:[#allocation2 + $0x150] sm:$0xff] }
  0x23   :  { %314 = vst [vmem:[#allocation5 + $0x118] sm:$0xff] %v186_v7  ;;  %v192_v19 = vmul.f32 3.0, %v64_v16  ;;  %v66_v21 = vld [vmem:[#allocation2 + $0x158] sm:$0xff]  ;;  %v67_v22 = vld [vmem:[#allocation2 + $0x160] sm:$0xff]  ;;  %315 = vst [vmem:[#allocation5 + $0x120] sm:$0xff] %v187_v11  ;;  %v193_v23 = vmul.f32 3.0, %v65_v20 }
  0x24   :  { %316 = vst [vmem:[#allocation5 + $0x128] sm:$0xff] %v188_v12  ;;  %317 = vst [vmem:[#allocation5 + $0x130] sm:$0xff] %v189_v13  ;;  %v194_v24 = vmul.f32 3.0, %v66_v21  ;;  %v195_v25 = vmul.f32 3.0, %v67_v22  ;;  %v68_v26 = vld [vmem:[#allocation2 + $0x168] sm:$0xff]  ;;  %v69_v27 = vld [vmem:[#allocation2 + $0x170] sm:$0xff] }
  0x25   :  { %v70_v28 = vld [vmem:[#allocation2 + $0x178] sm:$0xff]  ;;  %318 = vst [vmem:[#allocation5 + $0x138] sm:$0xff] %v190_v17  ;;  %319 = vst [vmem:[#allocation5 + $0x140] sm:$0xff] %v191_v18  ;;  %v196_v29 = vmul.f32 3.0, %v68_v26  ;;  %v197_v30 = vmul.f32 3.0, %v69_v27  ;;  %v71_v32 = vld [vmem:[#allocation2 + $0x180] sm:$0xff] }
  0x26   :  { %320 = vst [vmem:[#allocation5 + $0x148] sm:$0xff] %v192_v19  ;;  %v198_v31 = vmul.f32 3.0, %v70_v28  ;;  %v72_v33 = vld [vmem:[#allocation2 + $0x188] sm:$0xff]  ;;  %v73_v34 = vld [vmem:[#allocation2 + $0x190] sm:$0xff]  ;;  %321 = vst [vmem:[#allocation5 + $0x150] sm:$0xff] %v193_v23  ;;  %v199_v35 = vmul.f32 3.0, %v71_v32 }
  0x27   :  { %322 = vst [vmem:[#allocation5 + $0x158] sm:$0xff] %v194_v24  ;;  %323 = vst [vmem:[#allocation5 + $0x160] sm:$0xff] %v195_v25  ;;  %v200_v36 = vmul.f32 3.0, %v72_v33  ;;  %v201_v37 = vmul.f32 3.0, %v73_v34  ;;  %v74_v38 = vld [vmem:[#allocation2 + $0x198] sm:$0xff]  ;;  %v75_v39 = vld [vmem:[#allocation2 + $0x1a0] sm:$0xff] }
  0x28   :  { %v76_v40 = vld [vmem:[#allocation2 + $0x1a8] sm:$0xff]  ;;  %324 = vst [vmem:[#allocation5 + $0x168] sm:$0xff] %v196_v29  ;;  %325 = vst [vmem:[#allocation5 + $0x170] sm:$0xff] %v197_v30  ;;  %v202_v41 = vmul.f32 3.0, %v74_v38  ;;  %v203_v42 = vmul.f32 3.0, %v75_v39  ;;  %v77_v44 = vld [vmem:[#allocation2 + $0x1b0] sm:$0xff] }
  0x29   :  { %326 = vst [vmem:[#allocation5 + $0x178] sm:$0xff] %v198_v31  ;;  %v204_v43 = vmul.f32 3.0, %v76_v40  ;;  %v78_v45 = vld [vmem:[#allocation2 + $0x1b8] sm:$0xff]  ;;  %v79_v46 = vld [vmem:[#allocation2 + $0x1c0] sm:$0xff]  ;;  %327 = vst [vmem:[#allocation5 + $0x180] sm:$0xff] %v199_v35  ;;  %v205_v47 = vmul.f32 3.0, %v77_v44 }
  0x2a   :  { %328 = vst [vmem:[#allocation5 + $0x188] sm:$0xff] %v200_v36  ;;  %329 = vst [vmem:[#allocation5 + $0x190] sm:$0xff] %v201_v37  ;;  %v206_v48 = vmul.f32 3.0, %v78_v45  ;;  %v207_v49 = vmul.f32 3.0, %v79_v46  ;;  %v80_v50 = vld [vmem:[#allocation2 + $0x1c8] sm:$0xff]  ;;  %v81_v51 = vld [vmem:[#allocation2 + $0x1d0] sm:$0xff] }
  0x2b   :  { %v82_v52 = vld [vmem:[#allocation2 + $0x1d8] sm:$0xff]  ;;  %330 = vst [vmem:[#allocation5 + $0x198] sm:$0xff] %v202_v41  ;;  %331 = vst [vmem:[#allocation5 + $0x1a0] sm:$0xff] %v203_v42  ;;  %v208_v53 = vmul.f32 3.0, %v80_v50  ;;  %v209_v54 = vmul.f32 3.0, %v81_v51  ;;  %v83_v56 = vld [vmem:[#allocation2 + $0x1e0] sm:$0xff] }
  0x2c   :  { %332 = vst [vmem:[#allocation5 + $0x1a8] sm:$0xff] %v204_v43  ;;  %v210_v55 = vmul.f32 3.0, %v82_v52  ;;  %v84_v57 = vld [vmem:[#allocation2 + $0x1e8] sm:$0xff]  ;;  %v85_v58 = vld [vmem:[#allocation2 + $0x1f0] sm:$0xff]  ;;  %333 = vst [vmem:[#allocation5 + $0x1b0] sm:$0xff] %v205_v47  ;;  %v211_v59 = vmul.f32 3.0, %v83_v56 }
  0x2d   :  { %334 = vst [vmem:[#allocation5 + $0x1b8] sm:$0xff] %v206_v48  ;;  %335 = vst [vmem:[#allocation5 + $0x1c0] sm:$0xff] %v207_v49  ;;  %v212_v60 = vmul.f32 3.0, %v84_v57  ;;  %v213_v61 = vmul.f32 3.0, %v85_v58  ;;  %v86_v62 = vld [vmem:[#allocation2 + $0x1f8] sm:$0xff]  ;;  %v87_v63 = vld [vmem:[#allocation2 + $0x200] sm:$0xff] }
  0x2e   :  { %v88_v0 = vld [vmem:[#allocation2 + $0x208] sm:$0xff]  ;;  %336 = vst [vmem:[#allocation5 + $0x1c8] sm:$0xff] %v208_v53  ;;  %337 = vst [vmem:[#allocation5 + $0x1d0] sm:$0xff] %v209_v54  ;;  %v214_v1 = vmul.f32 3.0, %v86_v62  ;;  %v215_v2 = vmul.f32 3.0, %v87_v63  ;;  %v89_v4 = vld [vmem:[#allocation2 + $0x210] sm:$0xff] }
  0x2f   :  { %338 = vst [vmem:[#allocation5 + $0x1d8] sm:$0xff] %v210_v55  ;;  %v216_v3 = vmul.f32 3.0, %v88_v0  ;;  %v90_v5 = vld [vmem:[#allocation2 + $0x218] sm:$0xff]  ;;  %v91_v6 = vld [vmem:[#allocation2 + $0x220] sm:$0xff]  ;;  %339 = vst [vmem:[#allocation5 + $0x1e0] sm:$0xff] %v211_v59  ;;  %v217_v7 = vmul.f32 3.0, %v89_v4 }
  0x30   :  { %340 = vst [vmem:[#allocation5 + $0x1e8] sm:$0xff] %v212_v60  ;;  %341 = vst [vmem:[#allocation5 + $0x1f0] sm:$0xff] %v213_v61  ;;  %v218_v8 = vmul.f32 3.0, %v90_v5  ;;  %v219_v9 = vmul.f32 3.0, %v91_v6  ;;  %v92_v10 = vld [vmem:[#allocation2 + $0x228] sm:$0xff]  ;;  %v93_v11 = vld [vmem:[#allocation2 + $0x230] sm:$0xff] }
  0x31   :  { %v94_v12 = vld [vmem:[#allocation2 + $0x238] sm:$0xff]  ;;  %342 = vst [vmem:[#allocation5 + $0x1f8] sm:$0xff] %v214_v1  ;;  %343 = vst [vmem:[#allocation5 + $0x200] sm:$0xff] %v215_v2  ;;  %v220_v13 = vmul.f32 3.0, %v92_v10  ;;  %v221_v14 = vmul.f32 3.0, %v93_v11  ;;  %v95_v16 = vld [vmem:[#allocation2 + $0x240] sm:$0xff] }
  0x32   :  { %344 = vst [vmem:[#allocation5 + $0x208] sm:$0xff] %v216_v3  ;;  %v222_v15 = vmul.f32 3.0, %v94_v12  ;;  %v96_v17 = vld [vmem:[#allocation2 + $0x248] sm:$0xff]  ;;  %v97_v18 = vld [vmem:[#allocation2 + $0x250] sm:$0xff]  ;;  %345 = vst [vmem:[#allocation5 + $0x210] sm:$0xff] %v217_v7  ;;  %v223_v19 = vmul.f32 3.0, %v95_v16 }
  0x33   :  { %346 = vst [vmem:[#allocation5 + $0x218] sm:$0xff] %v218_v8  ;;  %347 = vst [vmem:[#allocation5 + $0x220] sm:$0xff] %v219_v9  ;;  %v224_v20 = vmul.f32 3.0, %v96_v17  ;;  %v225_v21 = vmul.f32 3.0, %v97_v18  ;;  %v98_v22 = vld [vmem:[#allocation2 + $0x258] sm:$0xff]  ;;  %v99_v23 = vld [vmem:[#allocation2 + $0x260] sm:$0xff] }
  0x34   :  { %v100_v24 = vld [vmem:[#allocation2 + $0x268] sm:$0xff]  ;;  %348 = vst [vmem:[#allocation5 + $0x228] sm:$0xff] %v220_v13  ;;  %349 = vst [vmem:[#allocation5 + $0x230] sm:$0xff] %v221_v14  ;;  %v226_v25 = vmul.f32 3.0, %v98_v22  ;;  %v227_v26 = vmul.f32 3.0, %v99_v23  ;;  %v101_v28 = vld [vmem:[#allocation2 + $0x270] sm:$0xff] }
  0x35   :  { %350 = vst [vmem:[#allocation5 + $0x238] sm:$0xff] %v222_v15  ;;  %v228_v27 = vmul.f32 3.0, %v100_v24  ;;  %v102_v29 = vld [vmem:[#allocation2 + $0x278] sm:$0xff]  ;;  %v103_v30 = vld [vmem:[#allocation2 + $0x280] sm:$0xff]  ;;  %351 = vst [vmem:[#allocation5 + $0x240] sm:$0xff] %v223_v19  ;;  %v229_v31 = vmul.f32 3.0, %v101_v28 }
  0x36   :  { %352 = vst [vmem:[#allocation5 + $0x248] sm:$0xff] %v224_v20  ;;  %353 = vst [vmem:[#allocation5 + $0x250] sm:$0xff] %v225_v21  ;;  %v230_v32 = vmul.f32 3.0, %v102_v29  ;;  %v231_v33 = vmul.f32 3.0, %v103_v30  ;;  %v104_v34 = vld [vmem:[#allocation2 + $0x288] sm:$0xff]  ;;  %v105_v35 = vld [vmem:[#allocation2 + $0x290] sm:$0xff] }
  0x37   :  { %v106_v36 = vld [vmem:[#allocation2 + $0x298] sm:$0xff]  ;;  %354 = vst [vmem:[#allocation5 + $0x258] sm:$0xff] %v226_v25  ;;  %355 = vst [vmem:[#allocation5 + $0x260] sm:$0xff] %v227_v26  ;;  %v232_v37 = vmul.f32 3.0, %v104_v34  ;;  %v233_v38 = vmul.f32 3.0, %v105_v35  ;;  %v107_v40 = vld [vmem:[#allocation2 + $0x2a0] sm:$0xff] }
  0x38   :  { %356 = vst [vmem:[#allocation5 + $0x268] sm:$0xff] %v228_v27  ;;  %v234_v39 = vmul.f32 3.0, %v106_v36  ;;  %v108_v41 = vld [vmem:[#allocation2 + $0x2a8] sm:$0xff]  ;;  %v109_v42 = vld [vmem:[#allocation2 + $0x2b0] sm:$0xff]  ;;  %357 = vst [vmem:[#allocation5 + $0x270] sm:$0xff] %v229_v31  ;;  %v235_v43 = vmul.f32 3.0, %v107_v40 }
  0x39   :  { %358 = vst [vmem:[#allocation5 + $0x278] sm:$0xff] %v230_v32  ;;  %359 = vst [vmem:[#allocation5 + $0x280] sm:$0xff] %v231_v33  ;;  %v236_v44 = vmul.f32 3.0, %v108_v41  ;;  %v237_v45 = vmul.f32 3.0, %v109_v42  ;;  %v110_v46 = vld [vmem:[#allocation2 + $0x2b8] sm:$0xff]  ;;  %v111_v47 = vld [vmem:[#allocation2 + $0x2c0] sm:$0xff] }
  0x3a   :  { %v112_v48 = vld [vmem:[#allocation2 + $0x2c8] sm:$0xff]  ;;  %360 = vst [vmem:[#allocation5 + $0x288] sm:$0xff] %v232_v37  ;;  %361 = vst [vmem:[#allocation5 + $0x290] sm:$0xff] %v233_v38  ;;  %v238_v49 = vmul.f32 3.0, %v110_v46  ;;  %v239_v50 = vmul.f32 3.0, %v111_v47  ;;  %v113_v52 = vld [vmem:[#allocation2 + $0x2d0] sm:$0xff] }
  0x3b   :  { %362 = vst [vmem:[#allocation5 + $0x298] sm:$0xff] %v234_v39  ;;  %v240_v51 = vmul.f32 3.0, %v112_v48  ;;  %v114_v53 = vld [vmem:[#allocation2 + $0x2d8] sm:$0xff]  ;;  %v115_v54 = vld [vmem:[#allocation2 + $0x2e0] sm:$0xff]  ;;  %363 = vst [vmem:[#allocation5 + $0x2a0] sm:$0xff] %v235_v43  ;;  %v241_v55 = vmul.f32 3.0, %v113_v52 }
  0x3c   :  { %364 = vst [vmem:[#allocation5 + $0x2a8] sm:$0xff] %v236_v44  ;;  %365 = vst [vmem:[#allocation5 + $0x2b0] sm:$0xff] %v237_v45  ;;  %v242_v56 = vmul.f32 3.0, %v114_v53  ;;  %v243_v57 = vmul.f32 3.0, %v115_v54  ;;  %v116_v58 = vld [vmem:[#allocation2 + $0x2e8] sm:$0xff]  ;;  %v117_v59 = vld [vmem:[#allocation2 + $0x2f0] sm:$0xff] }
  0x3d   :  { %v118_v60 = vld [vmem:[#allocation2 + $0x2f8] sm:$0xff]  ;;  %366 = vst [vmem:[#allocation5 + $0x2b8] sm:$0xff] %v238_v49  ;;  %367 = vst [vmem:[#allocation5 + $0x2c0] sm:$0xff] %v239_v50  ;;  %v244_v61 = vmul.f32 3.0, %v116_v58  ;;  %v245_v62 = vmul.f32 3.0, %v117_v59  ;;  %v119_v0 = vld [vmem:[#allocation2 + $0x300] sm:$0xff] }
  0x3e   :  { %368 = vst [vmem:[#allocation5 + $0x2c8] sm:$0xff] %v240_v51  ;;  %v246_v63 = vmul.f32 3.0, %v118_v60  ;;  %v120_v1 = vld [vmem:[#allocation2 + $0x308] sm:$0xff]  ;;  %v121_v2 = vld [vmem:[#allocation2 + $0x310] sm:$0xff]  ;;  %369 = vst [vmem:[#allocation5 + $0x2d0] sm:$0xff] %v241_v55  ;;  %v247_v3 = vmul.f32 3.0, %v119_v0 }
  0x3f   :  { %370 = vst [vmem:[#allocation5 + $0x2d8] sm:$0xff] %v242_v56  ;;  %371 = vst [vmem:[#allocation5 + $0x2e0] sm:$0xff] %v243_v57  ;;  %v248_v4 = vmul.f32 3.0, %v120_v1  ;;  %v249_v5 = vmul.f32 3.0, %v121_v2  ;;  %v122_v6 = vld [vmem:[#allocation2 + $0x318] sm:$0xff]  ;;  %v123_v7 = vld [vmem:[#allocation2 + $0x320] sm:$0xff] }
  0x40   :  { %v124_v8 = vld [vmem:[#allocation2 + $0x328] sm:$0xff]  ;;  %372 = vst [vmem:[#allocation5 + $0x2e8] sm:$0xff] %v244_v61  ;;  %373 = vst [vmem:[#allocation5 + $0x2f0] sm:$0xff] %v245_v62  ;;  %v250_v9 = vmul.f32 3.0, %v122_v6  ;;  %v251_v10 = vmul.f32 3.0, %v123_v7  ;;  %v125_v12 = vld [vmem:[#allocation2 + $0x330] sm:$0xff] }
  0x41   :  { %374 = vst [vmem:[#allocation5 + $0x2f8] sm:$0xff] %v246_v63  ;;  %v252_v11 = vmul.f32 3.0, %v124_v8  ;;  %v126_v13 = vld [vmem:[#allocation2 + $0x338] sm:$0xff]  ;;  %v127_v14 = vld [vmem:[#allocation2 + $0x340] sm:$0xff]  ;;  %375 = vst [vmem:[#allocation5 + $0x300] sm:$0xff] %v247_v3  ;;  %v253_v15 = vmul.f32 3.0, %v125_v12 }
  0x42   :  { %376 = vst [vmem:[#allocation5 + $0x308] sm:$0xff] %v248_v4  ;;  %377 = vst [vmem:[#allocation5 + $0x310] sm:$0xff] %v249_v5  ;;  %v254_v16 = vmul.f32 3.0, %v126_v13  ;;  %v255_v17 = vmul.f32 3.0, %v127_v14  ;;  %v128_v18 = vld [vmem:[#allocation2 + $0x348] sm:$0xff]  ;;  %v129_v19 = vld [vmem:[#allocation2 + $0x350] sm:$0xff] }
  0x43   :  { %v130_v20 = vld [vmem:[#allocation2 + $0x358] sm:$0xff]  ;;  %378 = vst [vmem:[#allocation5 + $0x318] sm:$0xff] %v250_v9  ;;  %379 = vst [vmem:[#allocation5 + $0x320] sm:$0xff] %v251_v10  ;;  %v256_v21 = vmul.f32 3.0, %v128_v18  ;;  %v257_v22 = vmul.f32 3.0, %v129_v19  ;;  %v131_v24 = vld [vmem:[#allocation2 + $0x360] sm:$0xff] }
  0x44   :  { %380 = vst [vmem:[#allocation5 + $0x328] sm:$0xff] %v252_v11  ;;  %v258_v23 = vmul.f32 3.0, %v130_v20  ;;  %v132_v25 = vld [vmem:[#allocation2 + $0x368] sm:$0xff]  ;;  %v133_v26 = vld [vmem:[#allocation2 + $0x370] sm:$0xff]  ;;  %381 = vst [vmem:[#allocation5 + $0x330] sm:$0xff] %v253_v15  ;;  %v259_v27 = vmul.f32 3.0, %v131_v24 }
  0x45   :  { %382 = vst [vmem:[#allocation5 + $0x338] sm:$0xff] %v254_v16  ;;  %383 = vst [vmem:[#allocation5 + $0x340] sm:$0xff] %v255_v17  ;;  %v260_v28 = vmul.f32 3.0, %v132_v25  ;;  %v261_v29 = vmul.f32 3.0, %v133_v26  ;;  %v134_v30 = vld [vmem:[#allocation2 + $0x378] sm:$0xff]  ;;  %v135_v31 = vld [vmem:[#allocation2 + $0x380] sm:$0xff] }
  0x46   :  { %v136_v32 = vld [vmem:[#allocation2 + $0x388] sm:$0xff]  ;;  %384 = vst [vmem:[#allocation5 + $0x348] sm:$0xff] %v256_v21  ;;  %385 = vst [vmem:[#allocation5 + $0x350] sm:$0xff] %v257_v22  ;;  %v262_v33 = vmul.f32 3.0, %v134_v30  ;;  %v263_v34 = vmul.f32 3.0, %v135_v31  ;;  %v137_v36 = vld [vmem:[#allocation2 + $0x390] sm:$0xff] }
  0x47   :  { %386 = vst [vmem:[#allocation5 + $0x358] sm:$0xff] %v258_v23  ;;  %v264_v35 = vmul.f32 3.0, %v136_v32  ;;  %v138_v37 = vld [vmem:[#allocation2 + $0x398] sm:$0xff]  ;;  %v139_v38 = vld [vmem:[#allocation2 + $0x3a0] sm:$0xff]  ;;  %387 = vst [vmem:[#allocation5 + $0x360] sm:$0xff] %v259_v27  ;;  %v265_v39 = vmul.f32 3.0, %v137_v36 }
  0x48   :  { %388 = vst [vmem:[#allocation5 + $0x368] sm:$0xff] %v260_v28  ;;  %389 = vst [vmem:[#allocation5 + $0x370] sm:$0xff] %v261_v29  ;;  %v266_v40 = vmul.f32 3.0, %v138_v37  ;;  %v267_v41 = vmul.f32 3.0, %v139_v38  ;;  %v140_v42 = vld [vmem:[#allocation2 + $0x3a8] sm:$0xff]  ;;  %v141_v43 = vld [vmem:[#allocation2 + $0x3b0] sm:$0xff] }
  0x49   :  { %v142_v44 = vld [vmem:[#allocation2 + $0x3b8] sm:$0xff]  ;;  %390 = vst [vmem:[#allocation5 + $0x378] sm:$0xff] %v262_v33  ;;  %391 = vst [vmem:[#allocation5 + $0x380] sm:$0xff] %v263_v34  ;;  %v268_v45 = vmul.f32 3.0, %v140_v42  ;;  %v269_v46 = vmul.f32 3.0, %v141_v43  ;;  %v143_v48 = vld [vmem:[#allocation2 + $0x3c0] sm:$0xff] }
  0x4a   :  { %392 = vst [vmem:[#allocation5 + $0x388] sm:$0xff] %v264_v35  ;;  %v270_v47 = vmul.f32 3.0, %v142_v44  ;;  %v144_v49 = vld [vmem:[#allocation2 + $0x3c8] sm:$0xff]  ;;  %v145_v50 = vld [vmem:[#allocation2 + $0x3d0] sm:$0xff]  ;;  %393 = vst [vmem:[#allocation5 + $0x390] sm:$0xff] %v265_v39  ;;  %v271_v51 = vmul.f32 3.0, %v143_v48 }
  0x4b   :  { %394 = vst [vmem:[#allocation5 + $0x398] sm:$0xff] %v266_v40  ;;  %395 = vst [vmem:[#allocation5 + $0x3a0] sm:$0xff] %v267_v41  ;;  %v272_v52 = vmul.f32 3.0, %v144_v49  ;;  %v273_v53 = vmul.f32 3.0, %v145_v50  ;;  %v146_v54 = vld [vmem:[#allocation2 + $0x3d8] sm:$0xff]  ;;  %v147_v55 = vld [vmem:[#allocation2 + $0x3e0] sm:$0xff] }
  0x4c   :  { %v148_v56 = vld [vmem:[#allocation2 + $0x3e8] sm:$0xff]  ;;  %396 = vst [vmem:[#allocation5 + $0x3a8] sm:$0xff] %v268_v45  ;;  %397 = vst [vmem:[#allocation5 + $0x3b0] sm:$0xff] %v269_v46  ;;  %v274_v57 = vmul.f32 3.0, %v146_v54  ;;  %v275_v58 = vmul.f32 3.0, %v147_v55  ;;  %v149_v60 = vld [vmem:[#allocation2 + $0x3f0] sm:$0xff] }
  0x4d   :  { %398 = vst [vmem:[#allocation5 + $0x3b8] sm:$0xff] %v270_v47  ;;  %v276_v59 = vmul.f32 3.0, %v148_v56  ;;  %v150_v61 = vld [vmem:[#allocation2 + $0x3f8] sm:$0xff]  ;;  %399 = vst [vmem:[#allocation5 + $0x3c0] sm:$0xff] %v271_v51  ;;  %v277_v62 = vmul.f32 3.0, %v149_v60 }
  0x4e   :  { %400 = vst [vmem:[#allocation5 + $0x3c8] sm:$0xff] %v272_v52  ;;  %401 = vst [vmem:[#allocation5 + $0x3d0] sm:$0xff] %v273_v53  ;;  %v278_v63 = vmul.f32 3.0, %v150_v61 }
  0x4f   :  { %402 = vst [vmem:[#allocation5 + $0x3d8] sm:$0xff] %v274_v57  ;;  %403 = vst [vmem:[#allocation5 + $0x3e0] sm:$0xff] %v275_v58 }
  0x50   :  { %404 = vst [vmem:[#allocation5 + $0x3e8] sm:$0xff] %v276_v59  ;;  %405 = vst [vmem:[#allocation5 + $0x3f0] sm:$0xff] %v277_v62 }
  0x51   :  { %406 = vst [vmem:[#allocation5 + $0x3f8] sm:$0xff] %v278_v63 }
  0x52   :  { %459 = shalt.err (!%p456_p9)
}
  0x53   :  { %418 = dma.vmem_to_hbm [thread:$0]  %s413_s14, 16384, %s502_s1, [#allocation4], %s473_s9, %s473_s9, %s474_s10  }
  0x54   :  { %470 = dma.done.wait [#allocation4], 16384  }
  0x55   :  { %471 = vsyncadd [#allocation4], 4294950912 }
  0x56   :  { %422 = vsyncpa [#allocation3], 1 }
  0x57   :  { %423 = vsyncpa [#allocation4], 1 }

</bundles_post_ra>
